<compile_context>
chip_gen: v7x
topology: tpu7x:2x2x1
jax: 0.10.0
libtpu: 0.0.40
codegen_flags: <defaults>
</compile_context>

<pallas_src>
import math

import jax
import jax.numpy as jnp
from jax.experimental import pallas as pl
from jax.experimental.pallas import tpu as pltpu


MASK_VALUE = -1e30  # large finite negative; exp(MASK - m) underflows to 0


# --------------------------------------------------------------------------
# helpers
# --------------------------------------------------------------------------
def _pick_tile(total, candidates):
    """Largest candidate that evenly divides `total`, else the full extent."""
    for c in candidates:
        if c <= total and total % c == 0:
            return c
    return total


def _pick_head_group(n_heads, head_dim):
    """Smallest head group whose fused width (G*D) is a multiple of 128 lanes.

    Falls back to all heads, in which case the fused width equals emb_dim
    (the full last dim of the (B, S, E) arrays), which is also layout-legal.
    """
    for g in range(1, n_heads + 1):
        if n_heads % g == 0 and (g * head_dim) % 128 == 0:
            return g
    return n_heads


def _vmem_limit_bytes():
    """Chip-aware scoped-VMEM limit (headroom below physical capacity)."""
    cap = 64 * 1024 * 1024
    try:
        info = pltpu.get_tpu_info()
        cap = int(getattr(info, "vmem_capacity_bytes", cap))
    except Exception:
        pass
    # 48 MiB on a 64 MiB part (v7x), 100 MiB on 128 MiB parts (v5e/v6e).
    return int(min(max(cap - 16 * 1024 * 1024, 32 * 1024 * 1024),
                   100 * 1024 * 1024))


# --------------------------------------------------------------------------
# Stage 1: linear projection kernel  (y = x @ W^T + b), K-tiled reduction
# --------------------------------------------------------------------------
def _linear_kernel(x_ref, w_ref, b_ref, o_ref, acc_ref):
    kk = pl.program_id(2)

    @pl.when(kk == 0)
    def _init():
        acc_ref[...] = jnp.zeros_like(acc_ref)

    acc_ref[...] += jax.lax.dot_general(
        x_ref[...], w_ref[...],
        dimension_numbers=(((1,), (1,)), ((), ())),
        preferred_element_type=jnp.float32)

    @pl.when(kk == pl.num_programs(2) - 1)
    def _finalize():
        o_ref[...] = (acc_ref[...] + b_ref[...]).astype(o_ref.dtype)


def linear_pallas(x, w, b, *, vmem_limit, big_vmem, out_dtype=jnp.bfloat16):
    """x: (B, S, E_in), w: (E_out, E_in), b: (E_out,) -> (B, S, E_out)."""
    B, S, E_in = x.shape
    E_out = w.shape[0]
    M = B * S

    # bf16 activations/weights -> halves re-streamed HBM traffic & VMEM bufs.
    x2 = x.reshape(M, E_in).astype(jnp.bfloat16)
    w2 = w.astype(jnp.bfloat16)
    b2 = b.reshape(1, E_out).astype(jnp.float32)

    tm_cands = ((1024, 512, 256, 128, 64, 32, 16, 8) if big_vmem
                else (512, 256, 128, 64, 32, 16, 8))
    tm = _pick_tile(M, tm_cands)
    tn = _pick_tile(E_out, (512, 384, 256, 128))
    tk = _pick_tile(E_in, (512, 256, 128))

    out = pl.pallas_call(
        _linear_kernel,
        out_shape=jax.ShapeDtypeStruct((M, E_out), out_dtype),
        grid_spec=pltpu.PrefetchScalarGridSpec(
            num_scalar_prefetch=0,
            grid=(M // tm, E_out // tn, E_in // tk),
            in_specs=[
                pl.BlockSpec((tm, tk), lambda m, n, kk: (m, kk)),
                pl.BlockSpec((tn, tk), lambda m, n, kk: (n, kk)),
                pl.BlockSpec((1, tn), lambda m, n, kk: (0, n)),
            ],
            out_specs=pl.BlockSpec((tm, tn), lambda m, n, kk: (m, n)),
            scratch_shapes=[pltpu.VMEM((tm, tn), jnp.float32)],
        ),
        compiler_params=pltpu.CompilerParams(
            dimension_semantics=("parallel", "parallel", "arbitrary"),
            vmem_limit_bytes=vmem_limit),
    )(x2, w2, b2)
    return out.reshape(B, S, E_out)


# --------------------------------------------------------------------------
# RoPE kernel (applied once per element on the projected q / k)
# De-interleaved per-head layout: rotate-half + signed sin.
# --------------------------------------------------------------------------
def _make_rope_kernel(n_heads, head_dim):
    H, D = n_heads, head_dim
    D2 = D // 2

    def kernel(x_ref, cos_ref, sin_ref, o_ref):
        x = x_ref[0].astype(jnp.float32)      # (ts, E)
        cos = cos_ref[...]                    # (ts, D) = [cos | cos]
        sin = sin_ref[...]                    # (ts, D) = [-sin | sin]
        pieces = []
        for h in range(H):                    # static unroll over heads
            xh = x[:, h * D:(h + 1) * D]
            rot = jnp.concatenate([xh[:, D2:], xh[:, :D2]], axis=-1)
            pieces.append(xh * cos + rot * sin)
        o_ref[0] = jnp.concatenate(pieces, axis=-1).astype(o_ref.dtype)

    return kernel


def rope_pallas(x, cos_full, sin_signed, n_heads, *, vmem_limit):
    """x: (B, S, E) de-interleaved per head; cos/sin: (S, head_dim)."""
    B, S, E = x.shape
    D = E // n_heads
    ts = _pick_tile(S, (512, 256, 128))

    return pl.pallas_call(
        _make_rope_kernel(n_heads, D),
        out_shape=jax.ShapeDtypeStruct((B, S, E), x.dtype),
        grid_spec=pltpu.PrefetchScalarGridSpec(
            num_scalar_prefetch=0,
            grid=(B, S // ts),
            in_specs=[
                pl.BlockSpec((1, ts, E), lambda b, s: (b, s, 0)),
                pl.BlockSpec((ts, D), lambda b, s: (s, 0)),
                pl.BlockSpec((ts, D), lambda b, s: (s, 0)),
            ],
            out_specs=pl.BlockSpec((1, ts, E), lambda b, s: (b, s, 0)),
        ),
        compiler_params=pltpu.CompilerParams(
            dimension_semantics=("parallel", "parallel"),
            vmem_limit_bytes=vmem_limit),
    )(x, cos_full, sin_signed)


# --------------------------------------------------------------------------
# Stage 2: flash-attention kernel (head-grouped, online softmax over KV tiles)
# --------------------------------------------------------------------------
def _make_flash_kernel(n_group_heads, head_dim, q_tile, kv_tile, causal):
    G, D = n_group_heads, head_dim

    def kernel(q_ref, k_ref, v_ref, o_ref, m_ref, l_ref, acc_ref):
        q_idx = pl.program_id(2)
        kv_idx = pl.program_id(3)
        nkv = pl.num_programs(3)

        @pl.when(kv_idx == 0)
        def _init():
            m_ref[...] = jnp.full_like(m_ref, -jnp.inf)
            l_ref[...] = jnp.zeros_like(l_ref)
            acc_ref[...] = jnp.zeros_like(acc_ref)

        def compute(masked):
            if masked:
                row = (q_idx * q_tile +
                       jax.lax.broadcasted_iota(jnp.int32, (q_tile, kv_tile), 0))
                col = (kv_idx * kv_tile +
                       jax.lax.broadcasted_iota(jnp.int32, (q_tile, kv_tile), 1))
                keep = col <= row

            for g in range(G):               # static unroll over grouped heads
                lo = g * D
                hi = lo + D
                qg = q_ref[0, :, lo:hi]      # (tq, D)  bf16 (scale/RoPE applied)
                kg = k_ref[0, :, lo:hi]      # (tkv, D) bf16
                vg = v_ref[0, :, lo:hi]      # (tkv, D) bf16

                s = jax.lax.dot_general(
                    qg, kg,
                    dimension_numbers=(((1,), (1,)), ((), ())),
                    preferred_element_type=jnp.float32)        # (tq, tkv)
                if masked:
                    s = jnp.where(keep, s, MASK_VALUE)

                m_prev = m_ref[g]                               # (tq, 1)
                m_new = jnp.maximum(m_prev,
                                    jnp.max(s, axis=-1, keepdims=True))
                alpha = jnp.exp(m_prev - m_new)
                p = jnp.exp(s - m_new)
                l_ref[g] = alpha * l_ref[g] + jnp.sum(p, axis=-1, keepdims=True)
                acc_ref[g] = alpha * acc_ref[g] + jax.lax.dot_general(
                    p.astype(vg.dtype), vg,
                    dimension_numbers=(((1,), (0,)), ((), ())),
                    preferred_element_type=jnp.float32)
                m_ref[g] = m_new

        if causal:
            q_start = q_idx * q_tile
            q_end = q_start + (q_tile - 1)
            kv_start = kv_idx * kv_tile
            kv_end = kv_start + (kv_tile - 1)
            # Fully-below-diagonal tiles: no iota / compare / select work.
            pl.when(kv_end <= q_start)(lambda: compute(False))
            # Diagonal-straddling tiles: apply the mask.
            pl.when(jnp.logical_and(kv_start <= q_end, kv_end > q_start))(
                lambda: compute(True))
            # Fully-above-diagonal tiles are skipped entirely.
            # (kv tile 0 is always computed, so every row gets a finite m
            #  before any fully-masked scores can contribute.)
        else:
            compute(False)

        @pl.when(kv_idx == nkv - 1)
        def _finalize():
            inv = 1.0 / l_ref[...]           # exact; once per q tile
            pieces = [acc_ref[g] * inv[g] for g in range(G)]
            # lane-dense (tq, G*D) store into the (B, Sq, E) output layout
            o_ref[0] = jnp.concatenate(pieces, axis=-1).astype(o_ref.dtype)

    return kernel


def _flash_attention(qp, kp, vp, n_heads, head_dim, causal, out_dtype,
                     vmem_limit, big_vmem):
    B, Sq, E = qp.shape
    _, Sk, _ = kp.shape
    G = _pick_head_group(n_heads, head_dim)
    HG = n_heads // G
    GD = G * head_dim

    tq = _pick_tile(Sq, (512, 256, 128) if big_vmem else (256, 128))
    tkv = _pick_tile(Sk, (1024, 512, 256, 128) if big_vmem else (512, 256, 128))
    nq = Sq // tq
    nkv = Sk // tkv

    kernel = _make_flash_kernel(G, head_dim, tq, tkv, causal)

    return pl.pallas_call(
        kernel,
        out_shape=jax.ShapeDtypeStruct((B, Sq, E), out_dtype),
        grid_spec=pltpu.PrefetchScalarGridSpec(
            num_scalar_prefetch=0,
            grid=(B, HG, nq, nkv),
            in_specs=[
                pl.BlockSpec((1, tq, GD), lambda b, hg, qi, ki: (b, qi, hg)),
                pl.BlockSpec((1, tkv, GD), lambda b, hg, qi, ki: (b, ki, hg)),
                pl.BlockSpec((1, tkv, GD), lambda b, hg, qi, ki: (b, ki, hg)),
            ],
            out_specs=pl.BlockSpec((1, tq, GD),
                                   lambda b, hg, qi, ki: (b, qi, hg)),
            scratch_shapes=[
                pltpu.VMEM((G, tq, 1), jnp.float32),           # running max m
                pltpu.VMEM((G, tq, 1), jnp.float32),           # running sum l
                pltpu.VMEM((G, tq, head_dim), jnp.float32),    # accumulator
            ],
        ),
        compiler_params=pltpu.CompilerParams(
            dimension_semantics=("parallel", "parallel", "parallel",
                                 "arbitrary"),
            vmem_limit_bytes=vmem_limit),
    )(qp, kp, vp)


# --------------------------------------------------------------------------
# Wrapper (mirrors Attention.forward)
# --------------------------------------------------------------------------
def attention_pallas(params, q, k, v, n_heads, rope_angles=None, causal=False):
    B, Sq, E = q.shape
    _, Sk, _ = k.shape
    H = n_heads
    D = E // H
    use_rope = rope_angles is not None
    scale = 1.0 / math.sqrt(D)
    if causal:
        # Like the torch module, causal masking assumes q_seq_len == k_seq_len.
        assert Sq == Sk, "causal masking requires q_seq_len == k_seq_len"

    vmem_limit = _vmem_limit_bytes()
    big_vmem = vmem_limit >= 80 * 1024 * 1024

    wq, bq = params["wq"], params["bq"]
    wk, bk = params["wk"], params["bk"]
    wv, bv = params["wv"], params["bv"]

    if use_rope:
        assert D % 2 == 0
        # De-interleave each head's output features (even dims first, odd dims
        # second) so RoPE becomes a rotate-half.  Scores are invariant to
        # applying the same within-head permutation to both q and k, and v is
        # untouched, so the final output exactly matches interleaved RoPE.
        idx = jnp.arange(E).reshape(H, D)
        perm = jnp.concatenate([idx[:, 0::2], idx[:, 1::2]], axis=1).reshape(E)
        wq, bq = wq[perm], bq[perm]
        wk, bk = wk[perm], bk[perm]

    # Fold the 1/sqrt(head_dim) score scale into the q projection (free).
    wq = wq * scale
    bq = bq * scale

    # Stage 1: projections (bf16 outputs feed the attention stage).  Fuse
    # GEMMs when the activation inputs alias to cut HBM reads.
    if (q is k) and (k is v):
        w_all = jnp.concatenate([wq, wk, wv], axis=0)
        b_all = jnp.concatenate([bq, bk, bv], axis=0)
        qkv = linear_pallas(q, w_all, b_all,
                            vmem_limit=vmem_limit, big_vmem=big_vmem)
        qp, kp, vp = qkv[..., :E], qkv[..., E:2 * E], qkv[..., 2 * E:]
    elif k is v:
        qp = linear_pallas(q, wq, bq, vmem_limit=vmem_limit, big_vmem=big_vmem)
        w_kv = jnp.concatenate([wk, wv], axis=0)
        b_kv = jnp.concatenate([bk, bv], axis=0)
        kvp = linear_pallas(k, w_kv, b_kv,
                            vmem_limit=vmem_limit, big_vmem=big_vmem)
        kp, vp = kvp[..., :E], kvp[..., E:]
    else:
        qp = linear_pallas(q, wq, bq, vmem_limit=vmem_limit, big_vmem=big_vmem)
        kp = linear_pallas(k, wk, bk, vmem_limit=vmem_limit, big_vmem=big_vmem)
        vp = linear_pallas(v, wv, bv, vmem_limit=vmem_limit, big_vmem=big_vmem)

    # RoPE hoisted out of the flash kernel: applied once per element here
    # instead of being recomputed for every kv tile inside the hot loop.
    if use_rope:
        angles = rope_angles.astype(jnp.float32)                # (max_seq, D//2)
        cos_p = jnp.cos(angles)
        sin_p = jnp.sin(angles)
        cos_full = jnp.concatenate([cos_p, cos_p], axis=-1)     # (max_seq, D)
        sin_signed = jnp.concatenate([-sin_p, sin_p], axis=-1)  # (max_seq, D)
        qp = rope_pallas(qp, cos_full[:Sq], sin_signed[:Sq], H,
                         vmem_limit=vmem_limit)
        kp = rope_pallas(kp, cos_full[:Sk], sin_signed[:Sk], H,
                         vmem_limit=vmem_limit)

    # Stage 2: flash attention; output dtype matches the module (input dtype).
    return _flash_attention(qp, kp, vp, H, D, causal, q.dtype,
                            vmem_limit, big_vmem)


# --------------------------------------------------------------------------
# Pure-JAX reference (mirrors the PyTorch forward exactly, f32)
# --------------------------------------------------------------------------
def attention_ref(params, q, k, v, n_heads, rope_angles=None, causal=False):
    B, Sq, E = q.shape
    _, Sk, _ = k.shape
    H = n_heads
    D = E // H
    hi = jax.lax.Precision.HIGHEST

    def lin(x, w, b):
        return jnp.einsum("bse,oe->bso", x, w, precision=hi) + b

    qp = lin(q, params["wq"], params["bq"])
    kp = lin(k, params["wk"], params["bk"])
    vp = lin(v, params["wv"], params["bv"])

    def heads(x, s):
        return x.reshape(B, s, H, D).transpose(0, 2, 1, 3)

    qh, kh, vh = heads(qp, Sq), heads(kp, Sk), heads(vp, Sk)

    if rope_angles is not None:
        sin = jnp.sin(rope_angles)[None, None]
        cos = jnp.cos(rope_angles)[None, None]

        def apply_rope(x):
            b, h, s, d = x.shape
            xv = x.reshape(b, h, s, d // 2, 2)
            t1, t2 = xv[..., 0], xv[..., 1]
            c, sn = cos[:, :, :s, :], sin[:, :, :s, :]
            out = jnp.stack([t1 * c - t2 * sn, t1 * sn + t2 * c], axis=-1)
            return out.reshape(b, h, s, d)

        qh, kh = apply_rope(qh), apply_rope(kh)

    scores = jnp.einsum("bhqd,bhkd->bhqk", qh, kh, precision=hi) / math.sqrt(D)
    if causal:
        m = jnp.tril(jnp.ones((Sk, Sk), dtype=bool))[None, None]
        scores = jnp.where(m, scores, -jnp.inf)
    probs = jax.nn.softmax(scores, axis=-1)
    attn = jnp.einsum("bhqk,bhkd->bhqd", probs, vh, precision=hi)
    return attn.transpose(0, 2, 1, 3).reshape(B, Sq, E)


# --------------------------------------------------------------------------
# Deterministic parameter init (nn.Linear-like uniform bounds)
# --------------------------------------------------------------------------
def init_params(key, emb_dim):
    keys = jax.random.split(key, 6)
    bound = 1.0 / math.sqrt(emb_dim)

    def u(kk, shape):
        return jax.random.uniform(kk, shape, jnp.float32, -bound, bound)

    return {
        "wq": u(keys[0], (emb_dim, emb_dim)), "bq": u(keys[1], (emb_dim,)),
        "wk": u(keys[2], (emb_dim, emb_dim)), "bk": u(keys[3], (emb_dim,)),
        "wv": u(keys[4], (emb_dim, emb_dim)), "bv": u(keys[5], (emb_dim,)),
    }


if __name__ == "__main__":
    key = jax.random.PRNGKey(0)
    B, S, E, H = 2, 8, 64, 8
    D = E // H

    kq, kk, kv, kx, kparam = jax.random.split(key, 5)
    q = jax.random.normal(kq, (B, S, E), jnp.float32)
    k = jax.random.normal(kk, (B, S, E), jnp.float32)
    v = jax.random.normal(kv, (B, S, E), jnp.float32)
    x = jax.random.normal(kx, (B, S, E), jnp.float32)
    params = init_params(kparam, E)

    # RoPE precomputed angles, shape (seq, head_dim // 2)
    pos = jnp.arange(S, dtype=jnp.float32)[:, None]
    inv_freq = 1.0 / (10000.0 ** (jnp.arange(0, D, 2, dtype=jnp.float32) / D))
    angles = pos * inv_freq[None, :]

    cases = [
        (q, k, v, None, False),      # module defaults (RoPE=False, mask=False)
        (q, k, v, angles, True),     # RoPE + causal, distinct q/k/v inputs
        (x, x, x, angles, True),     # self-attention -> fused QKV GEMM path
    ]
    for (qq, kk_, vv, rope_angles, causal) in cases:
        out = attention_pallas(params, qq, kk_, vv, H,
                               rope_angles=rope_angles, causal=causal)
        out = jax.block_until_ready(out)
        ref = attention_ref(params, qq, kk_, vv, H,
                            rope_angles=rope_angles, causal=causal)
        assert out.shape == (B, S, E)
        # bf16 MXU inputs -> compare against the f32 reference with a
        # correspondingly loose (but still meaningful) tolerance.
        if not bool(jnp.allclose(out, ref, atol=5e-2, rtol=5e-2)):
            raise SystemExit("MISMATCH")

    print("KERNEL_OK")
</pallas_src>

<mosaic_0001>
module attributes {stable_mosaic.version = 11 : i64} {
  func.func @_linear_kernel(%arg0: i32, %arg1: i32, %arg2: i32, %arg3: memref<16x64xbf16, #tpu.memory_space<vmem>>, %arg4: memref<64x64xbf16, #tpu.memory_space<vmem>>, %arg5: memref<1x64xf32, #tpu.memory_space<vmem>>, %arg6: memref<16x64xbf16, #tpu.memory_space<vmem>>, %arg7: memref<16x64xf32, #tpu.memory_space<vmem>>) attributes {dimension_semantics = [#tpu.dimension_semantics<parallel>, #tpu.dimension_semantics<parallel>, #tpu.dimension_semantics<arbitrary>], iteration_bounds = array<i64: 1, 1, 1>, scalar_prefetch = 0 : i64, scratch_operands = 1 : i64, tpu.core_type = #tpu.core_type<tc>, window_params = [{transform_indices = @transform_0, window_bounds = array<i64: 16, 64>}, {transform_indices = @transform_1, window_bounds = array<i64: 64, 64>}, {transform_indices = @transform_2, window_bounds = array<i64: 1, 64>}, {transform_indices = @transform_3, window_bounds = array<i64: 16, 64>}]} {
    %c0_i32 = arith.constant 0 : i32
    %0 = arith.cmpi eq, %arg2, %c0_i32 : i32
    %1 = arith.extui %0 : i1 to i32
    %c0_i32_0 = arith.constant 0 : i32
    %2 = arith.cmpi ne, %1, %c0_i32_0 : i32
    scf.if %2 {
      %cst_10 = arith.constant 0.000000e+00 : f32
      %12 = vector.broadcast %cst_10 : f32 to vector<16x64xf32>
      %c0_11 = arith.constant 0 : index
      %c0_12 = arith.constant 0 : index
      %13 = vector.load %arg7[%c0_11, %c0_12] : memref<16x64xf32, #tpu.memory_space<vmem>>, vector<16x64xf32>
      tpu.vector_store %arg7[%c0_11, %c0_12], %12 {strides = array<i32>} : memref<16x64xf32, #tpu.memory_space<vmem>>, vector<16x64xf32>,
    } else {
    }
    %c0 = arith.constant 0 : index
    %c0_1 = arith.constant 0 : index
    %3 = vector.load %arg7[%c0, %c0_1] : memref<16x64xf32, #tpu.memory_space<vmem>>, vector<16x64xf32>
    %c0_2 = arith.constant 0 : index
    %c0_3 = arith.constant 0 : index
    %4 = vector.load %arg3[%c0_2, %c0_3] : memref<16x64xbf16, #tpu.memory_space<vmem>>, vector<16x64xbf16>
    %c0_4 = arith.constant 0 : index
    %c0_5 = arith.constant 0 : index
    %5 = vector.load %arg4[%c0_4, %c0_5] : memref<64x64xbf16, #tpu.memory_space<vmem>>, vector<64x64xbf16>
    %cst = arith.constant dense<0.000000e+00> : vector<16x64xf32>
    %6 = tpu.matmul %4, %5, %cst {dimension_numbers = #tpu.dot_dimension_numbers<[1], [1], [0], [0], [0, 0, 1, 0], [], []>} : vector<16x64xbf16>, vector<64x64xbf16>, vector<16x64xf32> -> vector<16x64xf32>
    %7 = arith.addf %3, %6 : vector<16x64xf32>
    %c0_6 = arith.constant 0 : index
    %c0_7 = arith.constant 0 : index
    %8 = vector.load %arg7[%c0_6, %c0_7] : memref<16x64xf32, #tpu.memory_space<vmem>>, vector<16x64xf32>
    tpu.vector_store %arg7[%c0_6, %c0_7], %7 {strides = array<i32>} : memref<16x64xf32, #tpu.memory_space<vmem>>, vector<16x64xf32>,
    %c0_i32_8 = arith.constant 0 : i32
    %9 = arith.cmpi eq, %arg2, %c0_i32_8 : i32
    %10 = arith.extui %9 : i1 to i32
    %c0_i32_9 = arith.constant 0 : i32
    %11 = arith.cmpi ne, %10, %c0_i32_9 : i32
    scf.if %11 {
      %c0_10 = arith.constant 0 : index
      %c0_11 = arith.constant 0 : index
      %12 = vector.load %arg7[%c0_10, %c0_11] : memref<16x64xf32, #tpu.memory_space<vmem>>, vector<16x64xf32>
      %c0_12 = arith.constant 0 : index
      %c0_13 = arith.constant 0 : index
      %13 = vector.load %arg5[%c0_12, %c0_13] : memref<1x64xf32, #tpu.memory_space<vmem>>, vector<1x64xf32>
      %14 = vector.broadcast %13 : vector<1x64xf32> to vector<16x64xf32>
      %15 = arith.addf %12, %14 : vector<16x64xf32>
      %16 = arith.truncf %15 : vector<16x64xf32> to vector<16x64xbf16>
      %c0_14 = arith.constant 0 : index
      %c0_15 = arith.constant 0 : index
      %17 = vector.load %arg6[%c0_14, %c0_15] : memref<16x64xbf16, #tpu.memory_space<vmem>>, vector<16x64xbf16>
      tpu.vector_store %arg6[%c0_14, %c0_15], %16 {strides = array<i32>} : memref<16x64xbf16, #tpu.memory_space<vmem>>, vector<16x64xbf16>,
    } else {
    }
    return
  }
  func.func @transform_0(%arg0: i32, %arg1: i32, %arg2: i32) -> (i32, i32) {
    %c0_i32 = arith.constant 0 : i32
    return %arg0, %arg2 : i32, i32
  }
  func.func @transform_1(%arg0: i32, %arg1: i32, %arg2: i32) -> (i32, i32) {
    %c0_i32 = arith.constant 0 : i32
    return %arg1, %arg2 : i32, i32
  }
  func.func @transform_2(%arg0: i32, %arg1: i32, %arg2: i32) -> (i32, i32) {
    %c0_i32 = arith.constant 0 : i32
    %c0_i32_0 = arith.constant 0 : i32
    return %c0_i32, %arg1 : i32, i32
  }
  func.func @transform_3(%arg0: i32, %arg1: i32, %arg2: i32) -> (i32, i32) {
    %c0_i32 = arith.constant 0 : i32
    return %arg0, %arg1 : i32, i32
  }
}

</mosaic_0001>

<bundles_post_ra>
// kernel: tpu_custom_call.1
= control target key start
LH: loop header
LB: loop body
LE: loop exit
PB: predicated region body
PF: predicated region fallthrough
CT: control target
= control target key end

     0   :  { %8 = vsyncpa [#allocation4], 0  ;;  %s388_s0 = inlined_call_operand.hbm [shape: bf16[16,64], index: 0, kind: input, shape index: {}]   ;;  %s389_s1 = inlined_call_operand.hbm [shape: bf16[64,64], index: 1, kind: input, shape index: {}]   ;;  %s390_s2 = inlined_call_operand.vmem [shape: f32[1,64], index: 2, kind: input, shape index: {}]   ;;  %s391_s3 = inlined_call_operand.hbm [shape: bf16[16,64], index: 3, kind: output, shape index: {}]  }
   0x1   :  { %9 = vsyncpa [#allocation7], 0 }
   0x2   :  { %10 = vsyncpa [#allocation5], 0  ;;  %s304_s12 = smov [#allocation3]   ;;  %s232_s16 = scalar_lea.hbm %s388_s0, 128 }
   0x3   :  { %s16_s13 = sshll.u32 %s304_s12, 4  ;;  %p233_p0 = scmp.ne.s32.totalorder %s388_s0, %s232_s16  ;;  %s17_s13 = int_to_ptr.vmem [resolvable:$true] %s16_s13 }
   0x4   :  { %p236_p1 = scmp.lt.u32.totalorder %s232_s16, %s388_s0 }
   0x6   :  { %p238_p2 = pnand %p236_p1, %p233_p0 }
   0x8   :  { %241 = shalt.err (!%p238_p2)
}
   0x9   :  { %s242_s21 = scalar_lea.vmem %s17_s13, 128  ;;  %p247_p4 = scmp.lt.s32.totalorder %s17_s13, %s17_s13 }
   0xa   :  { %p243_p3 = scmp.ne.s32.totalorder %s17_s13, %s242_s21  ;;  %p248_p5 = scmp.lt.s32.totalorder %s242_s21, %s242_s21 }
   0xc   :  { %p249_p6 = por %p248_p5, %p247_p4 }
   0xe   :  { %p250_p7 = pnand %p249_p6, %p243_p3 }
  0x10   :  { %253 = shalt.err (!%p250_p7)
}
  0x11   :  { %s305_s22 = smov 64   ;;  %s306_s23 = smov 4  }
  0x12   :  { %22 = dma.hbm_to_vmem [thread:$0]  %s388_s0, 128, %s17_s13, [#allocation4], %s305_s22, %s305_s22, %s306_s23  }
  0x13   :  { %s307_s26 = smov [#allocation6]   ;;  %s254_s30 = scalar_lea.hbm %s389_s1, 512 }
  0x14   :  { %s28_s27 = sshll.u32 %s307_s26, 4  ;;  %p255_p8 = scmp.ne.s32.totalorder %s389_s1, %s254_s30  ;;  %s29_s27 = int_to_ptr.vmem [resolvable:$true] %s28_s27 }
  0x15   :  { %p258_p9 = scmp.lt.u32.totalorder %s254_s30, %s389_s1 }
  0x17   :  { %p260_p10 = pnand %p258_p9, %p255_p8 }
  0x19   :  { %263 = shalt.err (!%p260_p10)
}
  0x1a   :  { %s264_s8 = scalar_lea.vmem %s29_s27, 512  ;;  %p269_p12 = scmp.lt.s32.totalorder %s29_s27, %s29_s27 }
  0x1b   :  { %p265_p11 = scmp.ne.s32.totalorder %s29_s27, %s264_s8  ;;  %p270_p13 = scmp.lt.s32.totalorder %s264_s8, %s264_s8 }
  0x1d   :  { %p271_p0 = por %p270_p13, %p269_p12 }
  0x1f   :  { %p272_p1 = pnand %p271_p0, %p265_p11 }
  0x21   :  { %275 = shalt.err (!%p272_p1)
}
  0x22   :  { %34 = dma.hbm_to_vmem [thread:$0]  %s389_s1, 512, %s29_s27, [#allocation7], %s305_s22, %s305_s22, %s306_s23  }
  0x23   :  { %298 = dma.done.wait [#allocation4], 128  }
  0x24   :  { %299 = vsyncadd [#allocation4], 4294967168 }
  0x25   :  { %300 = dma.done.wait [#allocation7], 512  }
  0x26   :  { %301 = vsyncadd [#allocation7], 4294966784  ;;  %vm48_vm0 = vcmask 523264   ;;  %v308_v0 = vmov 0.0   ;;  %vm309_vm1 = vmmov 0   ;;  %v227_v1 = vld [vmem:[#allocation6] sm:$0xff]  }
  0x27   :  { %208 = vmatprep.subr.bf16.mxu0 %v308_v0  ;;  %49 = vst.msk [vmem:[#allocation2] sm:$0xff] %vm48_vm0, %v308_v0  ;;  %50 = vst.msk [vmem:[#allocation2 + $0x8] sm:$0xff] %vm48_vm0, %v308_v0  ;;  %216 = vmatprep.mubr.msk.bf16.mxu0 %vm309_vm1, %v308_v0  ;;  %v93_v2 = vsel %vm48_vm0, %v227_v1, 0  ;;  %v228_v3 = vld [vmem:[#allocation6 + $0x8] sm:$0xff]   ;;  %v229_v5 = vld [vmem:[#allocation6 + $0x10] sm:$0xff]   ;;  %vm171_vm2 = vcmask 519168  }
  0x28   :  { %209 = vmatpush3.bf16.xpose.msra.mxu0 %v93_v2  ;;  %v96_v4 = vsel %vm48_vm0, %v228_v3, 0  ;;  %v99_v6 = vsel %vm48_vm0, %v229_v5, 0  ;;  %v230_v7 = vld [vmem:[#allocation6 + $0x18] sm:$0xff]   ;;  %v198_v18 = vld [vmem:[%s390_s2] ss:$0 sm:$0xff]  ;;  %s310_s11 = smov [#allocation8]  }
  0x29   :  { %210 = vmatprep.subr.bf16.mxu0 %v308_v0  ;;  %v102_v8 = vsel %vm48_vm0, %v230_v7, 0  ;;  %v231_v9 = vld [vmem:[#allocation3] sm:$0xff]   ;;  %s179_s12 = sshll.u32 %s310_s11, 4  ;;  %s180_s12 = int_to_ptr.vmem [resolvable:$true] %s179_s12 }
  0x2a   :  { %s276_s13 = scalar_lea.vmem %s180_s12, 128  ;;  %p281_p3 = scmp.lt.s32.totalorder %s180_s12, %s180_s12 }
  0x2b   :  { %p277_p2 = scmp.ne.s32.totalorder %s180_s12, %s276_s13  ;;  %p282_p4 = scmp.lt.s32.totalorder %s276_s13, %s276_s13 }
  0x2d   :  { %p283_p5 = por %p282_p4, %p281_p3 }
  0x2e   :  { %v51_v10 = vld [vmem:[#allocation2] sm:$0xff]  ;;  %v52_v12 = vld [vmem:[#allocation2 + $0x8] sm:$0xff] }
  0x2f   :  { %p284_p6 = pnand %p283_p5, %p277_p2 }
  0x30   :  { %211 = vmatpush3.bf16.xpose.msra.mxu0 %v96_v4 }
  0x31   :  { %212 = vmatprep.subr.bf16.mxu0 %v308_v0 }
  0x38   :  { %213 = vmatpush3.bf16.xpose.msra.mxu0 %v99_v6 }
  0x39   :  { %214 = vmatprep.subr.bf16.mxu0 %v308_v0 }
  0x40   :  { %215 = vmatpush3.bf16.xpose.msra.mxu0 %v102_v8 }
  0x47   :  { %217 = vmatmul.mubr.msk.bf16.vlgmr.msra.gmra.mrb[0].mxu0 %vm48_vm0, %v231_v9 }
 0x11a   :  { %v138_v11 = vpop.f32.mrb[0].mxu0 }
 0x11b   :  { %v145_v13 = vadd.f32 %v138_v11, %v51_v10  ;;  %v218_v14 = vpop.f32.mrb[1].mxu0 }
 0x11c   :  { %v141_v15 = vpop.f32.mrb[2].mxu0 }
 0x11d   :  { %147 = vst.msk [vmem:[#allocation2] sm:$0xff] %vm48_vm0, %v145_v13  ;;  %v146_v16 = vadd.f32 %v141_v15, %v52_v12  ;;  %v219_v17 = vpop.f32.mrb[3].mxu0 }
 0x11f   :  { %148 = vst.msk [vmem:[#allocation2 + $0x8] sm:$0xff] %vm48_vm0, %v146_v16 }
 0x124   :  { %v152_v19 = vld [vmem:[#allocation2] sm:$0xff] }
 0x125   :  { %v161_v20 = vadd.f32 %v198_v18, %v152_v19 }
 0x126   :  { %v153_v21 = vld [vmem:[#allocation2 + $0x8] sm:$0xff] }
 0x127   :  { %v162_v22 = vadd.f32 %v198_v18, %v153_v21  ;;  %v201_v23 = vpack.c.bf16 %v161_v20, %v161_v20 }
 0x129   :  { %v202_v24 = vpack.c.bf16 %v162_v22, %v162_v22  ;;  %172 = vst.msk [vmem:[#allocation8] sm:$0xf] %vm171_vm2, %v201_v23 }
 0x12b   :  { %173 = vst.msk [vmem:[#allocation8 + $0x4] sm:$0xf] %vm171_vm2, %v202_v24 }
 0x12c   :  { %287 = shalt.err (!%p284_p6)
}
 0x12d   :  { %s288_s15 = scalar_lea.hbm %s391_s3, 128 }
 0x12e   :  { %p289_p7 = scmp.ne.s32.totalorder %s391_s3, %s288_s15  ;;  %p292_p8 = scmp.lt.u32.totalorder %s288_s15, %s391_s3 }
 0x130   :  { %p294_p9 = pnand %p292_p8, %p289_p7 }
 0x132   :  { %297 = shalt.err (!%p294_p9)
}
 0x133   :  { %185 = dma.vmem_to_hbm [thread:$0]  %s180_s12, 128, %s391_s3, [#allocation5], %s305_s22, %s305_s22, %s306_s23  }
 0x134   :  { %302 = dma.done.wait [#allocation5], 128  }
 0x135   :  { %303 = vsyncadd [#allocation5], 4294967168 }
 0x136   :  { %189 = vsyncpa [#allocation4], 1 }
 0x137   :  { %190 = vsyncpa [#allocation7], 1 }
 0x138   :  { %191 = vsyncpa [#allocation5], 1 }

</bundles_post_ra>
